<compile_context>
chip_gen: v6e
topology: v6e:2x2x1
jax: 0.10.0
libtpu: 0.0.40
codegen_flags: <defaults>
</compile_context>

<pallas_src>
import functools
import math

import jax
import jax.numpy as jnp
from jax import lax
from jax.experimental import pallas as pl
from jax.experimental.pallas import tpu as pltpu

_EPS = 1e-8           # matches torch.nn.functional.cosine_similarity default
_EPS2 = _EPS * _EPS
_MAX_KD = 1024        # widest lane-dense packing (8 x 128 lanes)
_MIB = 1024 * 1024


def _vmem_params():
    """(per-input block budget bytes, vmem_limit_bytes), generation-aware."""
    cap = 64 * _MIB                     # conservative default (v7x per-TC VMEM)
    try:
        cap = int(pltpu.get_tpu_info().vmem_capacity_bytes)
    except Exception:
        pass
    if cap >= 100 * _MIB:               # v5e / v6e: 128 MiB VMEM per TensorCore
        return 8 * _MIB, 72 * _MIB
    return 4 * _MIB, 48 * _MIB          # v7x (64 MiB per TC) or unknown


def _cos_loss_kernel(seg_ref, pred_ref, gt_ref, out_ref, acc_ref, *,
                     rows_packed, tr, inner_tiles):
    """Grid = (splits, row-tiles). Accumulate per-row cosine into a VMEM
    vector accumulator; reduce + write one partial sum per split at the end."""
    s = pl.program_id(0)          # split (TensorCore shard on 2-TC parts)
    j = pl.program_id(1)          # row-tile within the split

    @pl.when(j == 0)
    def _init():
        acc_ref[...] = jnp.zeros_like(acc_ref)

    p = pred_ref[...].astype(jnp.float32)       # (tr, kd)
    g = gt_ref[...].astype(jnp.float32)         # (tr, kd)
    seg = seg_ref[...]                          # (kd, k) 0/1, VMEM-resident

    # Segmented lane reductions via the (otherwise idle) MXU; column c of seg
    # sums lanes [c*d, (c+1)*d). Keeps the XLU/VPU free and avoids reshapes.
    dot = jnp.dot(p * g, seg, preferred_element_type=jnp.float32)   # (tr, k)
    pp = jnp.dot(p * p, seg, preferred_element_type=jnp.float32)    # (tr, k)
    gg = jnp.dot(g * g, seg, preferred_element_type=jnp.float32)    # (tr, k)

    # max(sqrt(pp),eps)*max(sqrt(gg),eps) == sqrt(max(pp,eps^2)*max(gg,eps^2)),
    # so one fused rsqrt is exactly equivalent to PyTorch's clamped norms.
    cos = dot * lax.rsqrt(jnp.maximum(pp, _EPS2) * jnp.maximum(gg, _EPS2))

    row_start = (s * inner_tiles + j) * tr
    is_full = row_start + tr <= rows_packed

    @pl.when(is_full)
    def _full_tile():                           # common case: no masking work
        acc_ref[...] += cos

    @pl.when(jnp.logical_not(is_full))
    def _tail_tile():                           # only the partial last tile
        row_ids = lax.broadcasted_iota(jnp.int32, cos.shape, 0)
        valid = (row_start + row_ids) < rows_packed
        acc_ref[...] += jnp.where(valid, cos, 0.0)

    @pl.when(j == inner_tiles - 1)
    def _finalize():
        # One cross-lane/sublane reduce per split; lane-dense output block.
        out_ref[...] = jnp.broadcast_to(jnp.sum(acc_ref[...]), out_ref.shape)


def cosine_similarity_loss(vector_pred, vector_gt, *, row_tile=None):
    """Pallas implementation of CosineSimilarityLoss.forward.

    vector_pred / vector_gt: identical shapes [..., D]. Returns scalar f32.
    `row_tile` optionally overrides the (packed) row-tile size (testing).
    """
    assert vector_pred.shape == vector_gt.shape
    d = int(vector_pred.shape[-1])
    pred2 = vector_pred.reshape(-1, d)
    gt2 = vector_gt.reshape(-1, d)
    rows = int(pred2.shape[0])

    # ---- lane-dense packing: (rows, d) -> (rows/k, k*d), kd multiple of 128 --
    base_kd = (d * 128) // math.gcd(d, 128)          # lcm(d, 128)
    if base_kd <= _MAX_KD:
        k0 = base_kd // d
        cands = [k0 * m for m in range(_MAX_KD // base_kd, 0, -1)]
        # Prefer the widest packing that divides rows (no padding); otherwise
        # take the widest and zero-pad a handful of rows (they contribute 0).
        k = next((c for c in cands if rows % c == 0), cands[0])
    else:
        k = 1                                        # d too awkward to pack
    pad_rows = (-rows) % k
    if pad_rows:
        pred2 = jnp.pad(pred2, ((0, pad_rows), (0, 0)))
        gt2 = jnp.pad(gt2, ((0, pad_rows), (0, 0)))
    rows_packed = (rows + pad_rows) // k
    kd = k * d
    pred2 = pred2.reshape(rows_packed, kd)
    gt2 = gt2.reshape(rows_packed, kd)

    # 0/1 segment-indicator (kd, k), built once (hoisted out of the kernel).
    seg = (jnp.arange(kd, dtype=jnp.int32)[:, None] // d
           == jnp.arange(k, dtype=jnp.int32)[None, :]).astype(jnp.float32)

    # ---- row tile from the VMEM budget (account for lane padding) ----------
    block_budget, vmem_limit = _vmem_params()
    kd_pad = ((kd + 127) // 128) * 128               # true VMEM lane footprint
    if row_tile is None:
        tr = max(8, (block_budget // (kd_pad * 4)) // 8 * 8)
    else:
        tr = max(8, (row_tile // 8) * 8)
    if rows_packed <= tr:
        tr = rows_packed                             # single full-extent block
    num_tiles = pl.cdiv(rows_packed, tr)

    # ---- 2-way split across TensorCores only when it costs nothing ---------
    # (real parallelism on 2-TC v7x; never duplicates a tile on 1-TC v5e/v6e)
    num_splits = 2 if (num_tiles >= 2 and num_tiles % 2 == 0) else 1
    inner_tiles = num_tiles // num_splits

    def in_map(si, ji):
        return (si * inner_tiles + ji, 0)

    kernel = functools.partial(_cos_loss_kernel, rows_packed=rows_packed,
                               tr=tr, inner_tiles=inner_tiles)

    out = pl.pallas_call(
        kernel,
        out_shape=jax.ShapeDtypeStruct((num_splits, 8, 128), jnp.float32),
        grid_spec=pltpu.PrefetchScalarGridSpec(
            num_scalar_prefetch=0,
            grid=(num_splits, inner_tiles),
            in_specs=[
                pl.BlockSpec((kd, k), lambda si, ji: (0, 0)),   # seg (resident)
                pl.BlockSpec((tr, kd), in_map),
                pl.BlockSpec((tr, kd), in_map),
            ],
            out_specs=pl.BlockSpec((1, 8, 128), lambda si, ji: (si, 0, 0)),
            scratch_shapes=[pltpu.VMEM((tr, k), jnp.float32)],
        ),
        # NOTE: on 2-TC parts the leading "parallel" axis is core-sharded by
        # Mosaic's megacore partitioner; pltpu.CORE_PARALLEL is an alternative
        # if a toolchain does not shard plain "parallel" axes.
        compiler_params=pltpu.CompilerParams(
            dimension_semantics=("parallel", "arbitrary"),
            vmem_limit_bytes=vmem_limit,
        ),
    )(seg, pred2, gt2)

    # Kernel accumulates cos; loss = mean(1 - cos) = (rows - sum_cos) / rows.
    cos_sum = jnp.sum(out[:, 0, 0])
    return (jnp.float32(rows) - cos_sum) / jnp.float32(rows)


def _reference_loss(vector_pred, vector_gt):
    p = vector_pred.astype(jnp.float32)
    g = vector_gt.astype(jnp.float32)
    dot = jnp.sum(p * g, axis=-1)
    np_ = jnp.maximum(jnp.linalg.norm(p, axis=-1), _EPS)
    ng_ = jnp.maximum(jnp.linalg.norm(g, axis=-1), _EPS)
    return jnp.mean(1.0 - dot / (np_ * ng_))


if __name__ == "__main__":
    key = jax.random.PRNGKey(0)
    k1, k2, k3, k4, k5, k6 = jax.random.split(key, 6)

    # Small batch of vectors (batch=2, seq=8, hidden=32); cosine over last dim.
    vp = jax.random.normal(k1, (2, 8, 32), dtype=jnp.float32)
    vg = jax.random.normal(k2, (2, 8, 32), dtype=jnp.float32)
    loss = jax.block_until_ready(cosine_similarity_loss(vp, vg))
    ref = _reference_loss(vp, vg)
    assert jnp.allclose(loss, ref, atol=2e-5, rtol=2e-5), (loss, ref)

    # Non-128-friendly D (=160, lcm packing) with a row count needing zero-pad.
    vp2 = jax.random.normal(k3, (3, 7, 160), dtype=jnp.float32)
    vg2 = jax.random.normal(k4, (3, 7, 160), dtype=jnp.float32)
    loss2 = jax.block_until_ready(cosine_similarity_loss(vp2, vg2))
    ref2 = _reference_loss(vp2, vg2)
    assert jnp.allclose(loss2, ref2, atol=2e-5, rtol=2e-5), (loss2, ref2)

    # Force the multi-tile path (2-way split + masked tail tile) via row_tile.
    vp3 = jax.random.normal(k5, (6, 100, 32), dtype=jnp.float32)
    vg3 = jax.random.normal(k6, (6, 100, 32), dtype=jnp.float32)
    loss3 = jax.block_until_ready(cosine_similarity_loss(vp3, vg3, row_tile=8))
    ref3 = _reference_loss(vp3, vg3)
    assert jnp.allclose(loss3, ref3, atol=2e-5, rtol=2e-5), (loss3, ref3)

    print("KERNEL_OK")
</pallas_src>

<mosaic_0001>
module attributes {stable_mosaic.version = 11 : i64} {
  func.func @_cos_loss_kernel(%arg0: i32, %arg1: i32, %arg2: memref<512x16xf32, #tpu.memory_space<vmem>>, %arg3: memref<1x512xf32, #tpu.memory_space<vmem>>, %arg4: memref<1x512xf32, #tpu.memory_space<vmem>>, %arg5: memref<1x8x128xf32, #tpu.memory_space<vmem>>, %arg6: memref<1x16xf32, #tpu.memory_space<vmem>>) attributes {dimension_semantics = [#tpu.dimension_semantics<parallel>, #tpu.dimension_semantics<arbitrary>], iteration_bounds = array<i64: 1, 1>, scalar_prefetch = 0 : i64, scratch_operands = 1 : i64, tpu.core_type = #tpu.core_type<tc>, window_params = [{pipeline_mode = #tpu.pipeline_mode<synchronous>, transform_indices = @transform_0, window_bounds = array<i64: 512, 16>}, {transform_indices = @transform_1, window_bounds = array<i64: 1, 512>}, {transform_indices = @transform_2, window_bounds = array<i64: 1, 512>}, {transform_indices = @transform_3, window_bounds = array<i64: 1, 8, 128>}]} {
    %c0_i32 = arith.constant 0 : i32
    %0 = arith.cmpi eq, %arg1, %c0_i32 : i32
    %1 = arith.extui %0 : i1 to i32
    %c0_i32_0 = arith.constant 0 : i32
    %2 = arith.cmpi ne, %1, %c0_i32_0 : i32
    scf.if %2 {
      %cst_17 = arith.constant 0.000000e+00 : f32
      %32 = vector.broadcast %cst_17 : f32 to vector<1x16xf32>
      %c0_18 = arith.constant 0 : index
      %c0_19 = arith.constant 0 : index
      %33 = vector.load %arg6[%c0_18, %c0_19] : memref<1x16xf32, #tpu.memory_space<vmem>>, vector<1x16xf32>
      tpu.vector_store %arg6[%c0_18, %c0_19], %32 {strides = array<i32>} : memref<1x16xf32, #tpu.memory_space<vmem>>, vector<1x16xf32>,
    } else {
    }
    %c0 = arith.constant 0 : index
    %c0_1 = arith.constant 0 : index
    %3 = vector.load %arg3[%c0, %c0_1] : memref<1x512xf32, #tpu.memory_space<vmem>>, vector<1x512xf32>
    %c0_2 = arith.constant 0 : index
    %c0_3 = arith.constant 0 : index
    %4 = vector.load %arg4[%c0_2, %c0_3] : memref<1x512xf32, #tpu.memory_space<vmem>>, vector<1x512xf32>
    %c0_4 = arith.constant 0 : index
    %c0_5 = arith.constant 0 : index
    %5 = vector.load %arg2[%c0_4, %c0_5] : memref<512x16xf32, #tpu.memory_space<vmem>>, vector<512x16xf32>
    %6 = arith.mulf %3, %4 : vector<1x512xf32>
    %cst = arith.constant dense<0.000000e+00> : vector<1x16xf32>
    %7 = tpu.matmul %6, %5, %cst {dimension_numbers = #tpu.dot_dimension_numbers<[1], [0], [0], [1], [0, 0, 1, 1], [], []>} : vector<1x512xf32>, vector<512x16xf32>, vector<1x16xf32> -> vector<1x16xf32>
    %8 = arith.mulf %3, %3 : vector<1x512xf32>
    %cst_6 = arith.constant dense<0.000000e+00> : vector<1x16xf32>
    %9 = tpu.matmul %8, %5, %cst_6 {dimension_numbers = #tpu.dot_dimension_numbers<[1], [0], [0], [1], [0, 0, 1, 1], [], []>} : vector<1x512xf32>, vector<512x16xf32>, vector<1x16xf32> -> vector<1x16xf32>
    %10 = arith.mulf %4, %4 : vector<1x512xf32>
    %cst_7 = arith.constant dense<0.000000e+00> : vector<1x16xf32>
    %11 = tpu.matmul %10, %5, %cst_7 {dimension_numbers = #tpu.dot_dimension_numbers<[1], [0], [0], [1], [0, 0, 1, 1], [], []>} : vector<1x512xf32>, vector<512x16xf32>, vector<1x16xf32> -> vector<1x16xf32>
    %cst_8 = arith.constant 1.000000e-16 : f32
    %12 = vector.broadcast %cst_8 : f32 to vector<1x16xf32>
    %13 = arith.maximumf %9, %12 : vector<1x16xf32>
    %cst_9 = arith.constant 1.000000e-16 : f32
    %14 = vector.broadcast %cst_9 : f32 to vector<1x16xf32>
    %15 = arith.maximumf %11, %14 : vector<1x16xf32>
    %16 = arith.mulf %13, %15 : vector<1x16xf32>
    %17 = math.rsqrt %16 : vector<1x16xf32>
    %18 = arith.mulf %7, %17 : vector<1x16xf32>
    %c1_i32 = arith.constant 1 : i32
    %19 = arith.muli %arg0, %c1_i32 : i32
    %20 = arith.addi %19, %arg1 : i32
    %c1_i32_10 = arith.constant 1 : i32
    %21 = arith.muli %20, %c1_i32_10 : i32
    %c1_i32_11 = arith.constant 1 : i32
    %22 = arith.addi %21, %c1_i32_11 : i32
    %c1_i32_12 = arith.constant 1 : i32
    %23 = arith.cmpi sle, %22, %c1_i32_12 : i32
    %24 = arith.extui %23 : i1 to i32
    %c0_i32_13 = arith.constant 0 : i32
    %25 = arith.cmpi ne, %24, %c0_i32_13 : i32
    scf.if %25 {
      %c0_17 = arith.constant 0 : index
      %c0_18 = arith.constant 0 : index
      %32 = vector.load %arg6[%c0_17, %c0_18] : memref<1x16xf32, #tpu.memory_space<vmem>>, vector<1x16xf32>
      %33 = arith.addf %32, %18 : vector<1x16xf32>
      %c0_19 = arith.constant 0 : index
      %c0_20 = arith.constant 0 : index
      %34 = vector.load %arg6[%c0_19, %c0_20] : memref<1x16xf32, #tpu.memory_space<vmem>>, vector<1x16xf32>
      tpu.vector_store %arg6[%c0_19, %c0_20], %33 {strides = array<i32>} : memref<1x16xf32, #tpu.memory_space<vmem>>, vector<1x16xf32>,
    } else {
    }
    %true = arith.constant true
    %26 = arith.xori %23, %true : i1
    %27 = arith.extui %26 : i1 to i32
    %c0_i32_14 = arith.constant 0 : i32
    %28 = arith.cmpi ne, %27, %c0_i32_14 : i32
    scf.if %28 {
      %32 = tpu.iota {dimensions = array<i32: 0>} : vector<1x16xi32>
      %33 = vector.broadcast %21 : i32 to vector<1x16xi32>
      %34 = arith.addi %33, %32 : vector<1x16xi32>
      %c1_i32_17 = arith.constant 1 : i32
      %35 = vector.broadcast %c1_i32_17 : i32 to vector<1x16xi32>
      %36 = arith.cmpi slt, %34, %35 : vector<1x16xi32>
      %c0_18 = arith.constant 0 : index
      %c0_19 = arith.constant 0 : index
      %37 = vector.load %arg6[%c0_18, %c0_19] : memref<1x16xf32, #tpu.memory_space<vmem>>, vector<1x16xf32>
      %cst_20 = arith.constant 0.000000e+00 : f32
      %38 = vector.broadcast %cst_20 : f32 to vector<1x16xf32>
      %39 = arith.select %36, %18, %38 : vector<1x16xi1>, vector<1x16xf32>
      %40 = arith.addf %37, %39 : vector<1x16xf32>
      %c0_21 = arith.constant 0 : index
      %c0_22 = arith.constant 0 : index
      %41 = vector.load %arg6[%c0_21, %c0_22] : memref<1x16xf32, #tpu.memory_space<vmem>>, vector<1x16xf32>
      tpu.vector_store %arg6[%c0_21, %c0_22], %40 {strides = array<i32>} : memref<1x16xf32, #tpu.memory_space<vmem>>, vector<1x16xf32>,
    } else {
    }
    %c0_i32_15 = arith.constant 0 : i32
    %29 = arith.cmpi eq, %arg1, %c0_i32_15 : i32
    %30 = arith.extui %29 : i1 to i32
    %c0_i32_16 = arith.constant 0 : i32
    %31 = arith.cmpi ne, %30, %c0_i32_16 : i32
    scf.if %31 {
      %c0_17 = arith.constant 0 : index
      %c0_18 = arith.constant 0 : index
      %32 = vector.load %arg6[%c0_17, %c0_18] : memref<1x16xf32, #tpu.memory_space<vmem>>, vector<1x16xf32>
      %33 = vector.shape_cast %32 : vector<1x16xf32> to vector<1x1x16xf32>
      %cst_19 = arith.constant dense<0.000000e+00> : vector<1xf32>
      %34 = vector.multi_reduction <add>, %33, %cst_19 [1, 2] : vector<1x1x16xf32> to vector<1xf32>
      %35 = vector.shape_cast %34 : vector<1xf32> to vector<1x1x1xf32>
      %36 = vector.extract %35[0, 0, 0] : f32 from vector<1x1x1xf32>
      %37 = vector.broadcast %36 : f32 to vector<1x8x128xf32>
      %c0_20 = arith.constant 0 : index
      %c0_21 = arith.constant 0 : index
      %c0_22 = arith.constant 0 : index
      %38 = vector.load %arg5[%c0_20, %c0_21, %c0_22] : memref<1x8x128xf32, #tpu.memory_space<vmem>>, vector<1x8x128xf32>
      tpu.vector_store %arg5[%c0_20, %c0_21, %c0_22], %37 {strides = array<i32>} : memref<1x8x128xf32, #tpu.memory_space<vmem>>, vector<1x8x128xf32>,
    } else {
    }
    return
  }
  func.func @transform_0(%arg0: i32, %arg1: i32) -> (i32, i32) {
    %c0_i32 = arith.constant 0 : i32
    %c0_i32_0 = arith.constant 0 : i32
    %c0_i32_1 = arith.constant 0 : i32
    return %c0_i32, %c0_i32_0 : i32, i32
  }
  func.func @transform_1(%arg0: i32, %arg1: i32) -> (i32, i32) {
    %c1_i32 = arith.constant 1 : i32
    %0 = arith.muli %arg0, %c1_i32 : i32
    %1 = arith.addi %0, %arg1 : i32
    %c0_i32 = arith.constant 0 : i32
    %c0_i32_0 = arith.constant 0 : i32
    return %1, %c0_i32 : i32, i32
  }
  func.func @transform_2(%arg0: i32, %arg1: i32) -> (i32, i32) {
    %c1_i32 = arith.constant 1 : i32
    %0 = arith.muli %arg0, %c1_i32 : i32
    %1 = arith.addi %0, %arg1 : i32
    %c0_i32 = arith.constant 0 : i32
    %c0_i32_0 = arith.constant 0 : i32
    return %1, %c0_i32 : i32, i32
  }
  func.func @transform_3(%arg0: i32, %arg1: i32) -> (i32, i32, i32) {
    %c0_i32 = arith.constant 0 : i32
    %c0_i32_0 = arith.constant 0 : i32
    %c0_i32_1 = arith.constant 0 : i32
    return %arg0, %c0_i32, %c0_i32_0 : i32, i32, i32
  }
}

</mosaic_0001>

<bundles_post_ra>
// kernel: tpu_custom_call.1
= control target key start
LH: loop header
LB: loop body
LE: loop exit
PB: predicated region body
PF: predicated region fallthrough
CT: control target
= control target key end

     0   :  { %v123_v38 = vlaneseq  ;;  %s1506_s0 = inlined_call_operand.vmem [shape: f32[512,16], index: 0, kind: input, shape index: {}]   ;;  %s1507_s1 = inlined_call_operand.vmem [shape: f32[1,512], index: 1, kind: input, shape index: {}]   ;;  %s1508_s2 = inlined_call_operand.vmem [shape: f32[1,512], index: 2, kind: input, shape index: {}]   ;;  %s1509_s3 = inlined_call_operand.hbm [shape: f32[1,8,128], index: 3, kind: output, shape index: {}]  }
   0x1   :  { %v942_v0 = vld [vmem:[%s1506_s0 + $0xf8] sm:$0xff]  ;;  %v964_v4 = vld [vmem:[%s1506_s0 + $0xf0] sm:$0xff]  ;;  %v986_v8 = vld [vmem:[%s1506_s0 + $0xe8] sm:$0xff] }
   0x2   :  { %v947_v1 = vld [vmem:[%s1506_s0 + $0x1f8] sm:$0xff]  ;;  %679 = vmatprep.subr.mxu0 %v942_v0  ;;  %v969_v5 = vld [vmem:[%s1506_s0 + $0x1f0] sm:$0xff]  ;;  %v993_v9 = vld [vmem:[%s1506_s0 + $0x1e8] sm:$0xff]  ;;  %v124_v48 = vshrl.u32 %v123_v38, 7 }
   0x3   :  { %v952_v2 = vld [vmem:[%s1506_s0 + $0x78] sm:$0xff]  ;;  %714 = vmatprep.subr.mxu1 %v947_v1  ;;  %v976_v6 = vld [vmem:[%s1506_s0 + $0x70] sm:$0xff]  ;;  %v998_v10 = vld [vmem:[%s1506_s0 + $0x68] sm:$0xff] }
   0x4   :  { %v959_v3 = vld [vmem:[%s1506_s0 + $0x178] sm:$0xff]  ;;  %680 = vmatpush3.msra.mxu0 %v952_v2  ;;  %v981_v7 = vld [vmem:[%s1506_s0 + $0x170] sm:$0xff]  ;;  %v1003_v11 = vld [vmem:[%s1506_s0 + $0x168] sm:$0xff] }
   0x5   :  { %715 = vmatpush3.msra.mxu1 %v959_v3  ;;  %681 = vmatprep.subr.mxu0 %v964_v4  ;;  %v1010_v12 = vld [vmem:[%s1506_s0 + $0xe0] sm:$0xff]  ;;  %v1034_v16 = vld [vmem:[%s1506_s0 + $0xd8] sm:$0xff]  ;;  %v1058_v20 = vld [vmem:[%s1506_s0 + $0xd0] sm:$0xff] }
   0x6   :  { %716 = vmatprep.subr.mxu1 %v969_v5  ;;  %682 = vmatpush3.msra.mxu0 %v976_v6  ;;  %v1015_v13 = vld [vmem:[%s1506_s0 + $0x1e0] sm:$0xff]  ;;  %v1039_v17 = vld [vmem:[%s1506_s0 + $0x1d8] sm:$0xff]  ;;  %v1063_v21 = vld [vmem:[%s1506_s0 + $0x1d0] sm:$0xff] }
   0x7   :  { %717 = vmatpush3.msra.mxu1 %v981_v7  ;;  %683 = vmatprep.subr.mxu0 %v986_v8  ;;  %v1022_v14 = vld [vmem:[%s1506_s0 + $0x60] sm:$0xff]  ;;  %v1046_v18 = vld [vmem:[%s1506_s0 + $0x58] sm:$0xff]  ;;  %v1070_v22 = vld [vmem:[%s1506_s0 + $0x50] sm:$0xff] }
   0x8   :  { %718 = vmatprep.subr.mxu1 %v993_v9  ;;  %v1027_v15 = vld [vmem:[%s1506_s0 + $0x160] sm:$0xff]  ;;  %684 = vmatpush3.msra.mxu0 %v998_v10  ;;  %v1051_v19 = vld [vmem:[%s1506_s0 + $0x158] sm:$0xff]  ;;  %v1075_v23 = vld [vmem:[%s1506_s0 + $0x150] sm:$0xff] }
   0x9   :  { %719 = vmatpush3.msra.mxu1 %v1003_v11  ;;  %685 = vmatprep.subr.mxu0 %v1010_v12  ;;  %v1082_v24 = vld [vmem:[%s1506_s0 + $0xc8] sm:$0xff]  ;;  %v1106_v28 = vld [vmem:[%s1506_s0 + $0xc0] sm:$0xff]  ;;  %v1130_v32 = vld [vmem:[%s1506_s0 + $0xb8] sm:$0xff] }
   0xa   :  { %720 = vmatprep.subr.mxu1 %v1015_v13  ;;  %686 = vmatpush3.msra.mxu0 %v1022_v14  ;;  %v1087_v25 = vld [vmem:[%s1506_s0 + $0x1c8] sm:$0xff]  ;;  %v1111_v29 = vld [vmem:[%s1506_s0 + $0x1c0] sm:$0xff]  ;;  %v1135_v33 = vld [vmem:[%s1506_s0 + $0x1b8] sm:$0xff] }
   0xb   :  { %721 = vmatpush3.msra.mxu1 %v1027_v15  ;;  %687 = vmatprep.subr.mxu0 %v1034_v16  ;;  %v1094_v26 = vld [vmem:[%s1506_s0 + $0x48] sm:$0xff]  ;;  %v1118_v30 = vld [vmem:[%s1506_s0 + $0x40] sm:$0xff]  ;;  %v1142_v34 = vld [vmem:[%s1506_s0 + $0x38] sm:$0xff] }
   0xc   :  { %722 = vmatprep.subr.mxu1 %v1039_v17  ;;  %688 = vmatpush3.msra.mxu0 %v1046_v18  ;;  %v1099_v27 = vld [vmem:[%s1506_s0 + $0x148] sm:$0xff]  ;;  %v1123_v31 = vld [vmem:[%s1506_s0 + $0x140] sm:$0xff]  ;;  %v1147_v35 = vld [vmem:[%s1506_s0 + $0x138] sm:$0xff] }
   0xd   :  { %723 = vmatpush3.msra.mxu1 %v1051_v19  ;;  %689 = vmatprep.subr.mxu0 %v1058_v20  ;;  %v1154_v36 = vld [vmem:[%s1506_s0 + $0xb0] sm:$0xff]  ;;  %v1178_v41 = vld [vmem:[%s1506_s0 + $0xa8] sm:$0xff]  ;;  %v1202_v45 = vld [vmem:[%s1506_s0 + $0xa0] sm:$0xff] }
   0xe   :  { %724 = vmatprep.subr.mxu1 %v1063_v21  ;;  %690 = vmatpush3.msra.mxu0 %v1070_v22  ;;  %v1159_v37 = vld [vmem:[%s1506_s0 + $0x1b0] sm:$0xff]  ;;  %v1183_v42 = vld [vmem:[%s1506_s0 + $0x1a8] sm:$0xff]  ;;  %1539 = vst [vmem:[#allocation9_spill] sm:$0xff] %v1202_v45  ;;  %v1207_v46 = vld [vmem:[%s1506_s0 + $0x1a0] sm:$0xff] }
   0xf   :  { %725 = vmatpush3.msra.mxu1 %v1075_v23  ;;  %691 = vmatprep.subr.mxu0 %v1082_v24  ;;  %v1166_v39 = vld [vmem:[%s1506_s0 + $0x30] sm:$0xff]  ;;  %1536 = vst [vmem:[#allocation6_spill] sm:$0xff] %v1183_v42  ;;  %v1190_v43 = vld [vmem:[%s1506_s0 + $0x28] sm:$0xff]  ;;  %v1212_v47 = vld [vmem:[%s1506_s0 + $0x20] sm:$0xff] }
  0x10   :  { %726 = vmatprep.subr.mxu1 %v1087_v25  ;;  %692 = vmatpush3.msra.mxu0 %v1094_v26  ;;  %v1171_v40 = vld [vmem:[%s1506_s0 + $0x130] sm:$0xff]  ;;  %1537 = vst [vmem:[#allocation7_spill] sm:$0xff] %v1190_v43  ;;  %v1195_v44 = vld [vmem:[%s1506_s0 + $0x128] sm:$0xff]  ;;  %1540 = vst [vmem:[#allocation10_spill] sm:$0xff] %v1212_v47 }
  0x11   :  { %727 = vmatpush3.msra.mxu1 %v1099_v27  ;;  %693 = vmatprep.subr.mxu0 %v1106_v28  ;;  %1538 = vst [vmem:[#allocation8_spill] sm:$0xff] %v1195_v44  ;;  %v1219_v49 = vld [vmem:[%s1506_s0 + $0x120] sm:$0xff]  ;;  %v1234_v52 = vld [vmem:[%s1506_s0 + $0x98] sm:$0xff] }
  0x12   :  { %728 = vmatprep.subr.mxu1 %v1111_v29  ;;  %694 = vmatpush3.msra.mxu0 %v1118_v30  ;;  %1541 = vst [vmem:[#allocation11_spill] sm:$0xff] %v1219_v49  ;;  %v1224_v50 = vld [vmem:[%s1507_s1] sm:$0xf]  ;;  %1542 = vst [vmem:[#allocation12_spill] sm:$0xff] %v1234_v52  ;;  %v1239_v53 = vld [vmem:[%s1506_s0 + $0x198] sm:$0xff] }
  0x13   :  { %729 = vmatpush3.msra.mxu1 %v1123_v31  ;;  %695 = vmatprep.subr.mxu0 %v1130_v32  ;;  %v56_v51 = vld [vmem:[%s1508_s2] sm:$0xf]  ;;  %1543 = vst [vmem:[#allocation13_spill] sm:$0xff] %v1239_v53 }
  0x14   :  { %730 = vmatprep.subr.mxu1 %v1135_v33  ;;  %696 = vmatpush3.msra.mxu0 %v1142_v34  ;;  %v1241_v54 = vmul.f32 %v56_v51, %v56_v51 }
  0x15   :  { %731 = vmatpush3.msra.mxu1 %v1147_v35  ;;  %697 = vmatprep.subr.mxu0 %v1154_v36 }
  0x16   :  { %732 = vmatprep.subr.mxu1 %v1159_v37  ;;  %698 = vmatpush3.msra.mxu0 %v1166_v39  ;;  %1544 = vst [vmem:[#allocation14_spill] sm:$0xff] %v1241_v54 }
  0x17   :  { %733 = vmatpush3.msra.mxu1 %v1171_v40  ;;  %699 = vmatprep.subr.mxu0 %v1178_v41 }
  0x18   :  { %734 = vmatprep.subr.mxu1 %v1183_v42  ;;  %700 = vmatpush3.msra.mxu0 %v1190_v43 }
  0x19   :  { %735 = vmatpush3.msra.mxu1 %v1195_v44 }
  0x1a   :  { %8 = vsyncpa [#allocation4], 0  ;;  %701 = vmatprep.subr.mxu0 %v1202_v45  ;;  %736 = vmatprep.subr.mxu1 %v1207_v46  ;;  %v1248_v55 = vld [vmem:[%s1506_s0 + $0x18] sm:$0xff]  ;;  %v1260_v57 = vld [vmem:[%s1506_s0 + $0x90] sm:$0xff]  ;;  %v121_v59 = vmul.f32 %v56_v51, %v1224_v50  ;;  %v1268_v60 = vsub.s32 1, %v124_v48  ;;  %v1282_v63 = vsub.s32 3, %v124_v48 }
  0x1b   :  { %1545 = vst [vmem:[#allocation15_spill] sm:$0xff] %v1248_v55  ;;  %v1253_v56 = vld [vmem:[%s1506_s0 + $0x118] sm:$0xff]  ;;  %702 = vmatpush3.msra.mxu0 %v1212_v47  ;;  %737 = vmatpush3.msra.mxu1 %v1219_v49  ;;  %1547 = vst [vmem:[#allocation17_spill] sm:$0xff] %v1260_v57  ;;  %v1265_v58 = vld [vmem:[%s1506_s0 + $0x190] sm:$0xff]  ;;  %v1284_v38 = vsub.s32 0, %v124_v48  ;;  %v1286_v51 = vsub.s32 2, %v124_v48 }
  0x1c   :  { %1546 = vst [vmem:[#allocation16_spill] sm:$0xff] %v1253_v56  ;;  %1548 = vst [vmem:[#allocation18_spill] sm:$0xff] %v1265_v58  ;;  %703 = vmatprep.subr.mxu0 %v1234_v52  ;;  %738 = vmatprep.subr.mxu1 %v1239_v53  ;;  %v1275_v61 = vld [vmem:[%s1506_s0 + $0x10] sm:$0xff]  ;;  %v1293_v53 = vld [vmem:[%s1506_s0 + $0x88] sm:$0xff]  ;;  %v138_v49 = vrot.slane %v121_v59, %v1282_v63  ;;  %vm53_vm0 = vcmask 122880  }
  0x1d   :  { %v1280_v62 = vld [vmem:[%s1506_s0 + $0x110] sm:$0xff]  ;;  %704 = vmatpush3.msra.mxu0 %v1248_v55  ;;  %739 = vmatpush3.msra.mxu1 %v1253_v56  ;;  %1549 = vst [vmem:[#allocation19_spill] sm:$0xff] %v1293_v53  ;;  %v1298_v52 = vld [vmem:[%s1506_s0 + $0x188] sm:$0xff]  ;;  %v1330_v47 = vld [vmem:[%s1506_s0 + $0x180] sm:$0xff]  ;;  %v130_v55 = vrot.slane %v121_v59, %v1268_v60 }
  0x1e   :  { %1550 = vst [vmem:[#allocation20_spill] sm:$0xff] %v1298_v52  ;;  %705 = vmatprep.subr.mxu0 %v1260_v57  ;;  %740 = vmatprep.subr.mxu1 %v1265_v58  ;;  %v1307_v48 = vld [vmem:[%s1506_s0 + $0x8] sm:$0xff]  ;;  %v1325_v58 = vld [vmem:[%s1506_s0 + $0x80] sm:$0xff] }
  0x1f   :  { %v1312_v56 = vld [vmem:[%s1506_s0 + $0x108] sm:$0xff]  ;;  %706 = vmatpush3.msra.mxu0 %v1275_v61  ;;  %741 = vmatpush3.msra.mxu1 %v1280_v62  ;;  %v1338_v57 = vld [vmem:[%s1506_s0] sm:$0xff] }
  0x20   :  { %707 = vmatprep.subr.mxu0 %v1293_v53  ;;  %742 = vmatprep.subr.mxu1 %v1298_v52  ;;  %v1346_v54 = vld [vmem:[%s1506_s0 + $0x100] sm:$0xff]  ;;  %v126_v53 = vrot.slane %v121_v59, %v1284_v38  ;;  %v134_v52 = vrot.slane %v121_v59, %v1286_v51  ;;  %s918_s0 = smov [#allocation3]  }
  0x21   :  { %708 = vmatpush3.msra.mxu0 %v1307_v48  ;;  %743 = vmatpush3.msra.mxu1 %v1312_v56  ;;  %v1554_v59 = vld [vmem:[#allocation13_spill] sm:$0xff]  ;;  %s659_s7 = sshll.u32 %s918_s0, 4  ;;  %s660_s7 = int_to_ptr.vmem [resolvable:$true] %s659_s7 }
  0x22   :  { %709 = vmatprep.subr.mxu0 %v1325_v58  ;;  %744 = vmatprep.subr.mxu1 %v1330_v47  ;;  %s895_s2 = scalar_lea.vmem %s660_s7, 128  ;;  %p900_p1 = scmp.lt.s32.totalorder %s660_s7, %s660_s7 }
  0x23   :  { %710 = vmatpush3.msra.mxu0 %v1338_v57  ;;  %207 = vmatprep.mubr.f32.mxu0 %v130_v55  ;;  %v1553_v55 = vld [vmem:[#allocation12_spill] sm:$0xff]  ;;  %p896_p0 = scmp.ne.s32.totalorder %s660_s7, %s895_s2  ;;  %p901_p2 = scmp.lt.s32.totalorder %s895_s2, %s895_s2 }
  0x24   :  { %745 = vmatpush3.msra.mxu1 %v1346_v54  ;;  %277 = vmatprep.mubr.f32.mxu1 %v138_v49  ;;  %v283_v49 = vmul.f32 %v1224_v50, %v1224_v50 }
  0x25   :  { %208 = vmatmul.mubr.f32.vlgmr.msra.gmra.mxu0 %v126_v53  ;;  %278 = vmatmul.mubr.f32.vlgmr.msra.gmra.mxu1 %v134_v52  ;;  %v1551_v52 = vld [vmem:[#allocation10_spill] sm:$0xff]  ;;  %v1552_v53 = vld [vmem:[#allocation11_spill] sm:$0xff]  ;;  %p902_p3 = por %p901_p2, %p900_p1 }
  0x26   :  { %749 = vmatprep.subr.mxu0 %v942_v0  ;;  %784 = vmatprep.subr.mxu1 %v947_v1  ;;  %v292_v50 = vrot.slane %v283_v49, %v1268_v60 }
  0x27   :  { %750 = vmatpush3.msra.mxu0 %v952_v2  ;;  %785 = vmatpush3.msra.mxu1 %v959_v3  ;;  %p903_p4 = pnand %p902_p3, %p896_p0 }
  0x28   :  { %751 = vmatprep.subr.mxu0 %v964_v4  ;;  %786 = vmatprep.subr.mxu1 %v969_v5 }
  0x29   :  { %752 = vmatpush3.msra.mxu0 %v976_v6  ;;  %787 = vmatpush3.msra.mxu1 %v981_v7 }
  0x2a   :  { %753 = vmatprep.subr.mxu0 %v986_v8  ;;  %788 = vmatprep.subr.mxu1 %v993_v9 }
  0x2b   :  { %754 = vmatpush3.msra.mxu0 %v998_v10  ;;  %789 = vmatpush3.msra.mxu1 %v1003_v11 }
  0x2c   :  { %755 = vmatprep.subr.mxu0 %v1010_v12  ;;  %790 = vmatprep.subr.mxu1 %v1015_v13 }
  0x2d   :  { %756 = vmatpush3.msra.mxu0 %v1022_v14  ;;  %791 = vmatpush3.msra.mxu1 %v1027_v15 }
  0x2e   :  { %757 = vmatprep.subr.mxu0 %v1034_v16  ;;  %792 = vmatprep.subr.mxu1 %v1039_v17 }
  0x2f   :  { %758 = vmatpush3.msra.mxu0 %v1046_v18  ;;  %793 = vmatpush3.msra.mxu1 %v1051_v19 }
  0x30   :  { %759 = vmatprep.subr.mxu0 %v1058_v20  ;;  %794 = vmatprep.subr.mxu1 %v1063_v21 }
  0x31   :  { %760 = vmatpush3.msra.mxu0 %v1070_v22  ;;  %795 = vmatpush3.msra.mxu1 %v1075_v23 }
  0x32   :  { %761 = vmatprep.subr.mxu0 %v1082_v24  ;;  %796 = vmatprep.subr.mxu1 %v1087_v25 }
  0x33   :  { %762 = vmatpush3.msra.mxu0 %v1094_v26  ;;  %797 = vmatpush3.msra.mxu1 %v1099_v27 }
  0x34   :  { %763 = vmatprep.subr.mxu0 %v1106_v28  ;;  %798 = vmatprep.subr.mxu1 %v1111_v29 }
  0x35   :  { %764 = vmatpush3.msra.mxu0 %v1118_v30  ;;  %799 = vmatpush3.msra.mxu1 %v1123_v31 }
  0x36   :  { %765 = vmatprep.subr.mxu0 %v1130_v32  ;;  %800 = vmatprep.subr.mxu1 %v1135_v33 }
  0x37   :  { %766 = vmatpush3.msra.mxu0 %v1142_v34  ;;  %801 = vmatpush3.msra.mxu1 %v1147_v35 }
  0x38   :  { %767 = vmatprep.subr.mxu0 %v1154_v36  ;;  %802 = vmatprep.subr.mxu1 %v1159_v37 }
  0x39   :  { %768 = vmatpush3.msra.mxu0 %v1166_v39  ;;  %803 = vmatpush3.msra.mxu1 %v1171_v40 }
  0x3a   :  { %769 = vmatprep.subr.mxu0 %v1178_v41  ;;  %804 = vmatprep.subr.mxu1 %v1183_v42  ;;  %v1555_v42 = vld [vmem:[#allocation15_spill] sm:$0xff] }
  0x3b   :  { %770 = vmatpush3.msra.mxu0 %v1190_v43  ;;  %805 = vmatpush3.msra.mxu1 %v1195_v44  ;;  %v1556_v43 = vld [vmem:[#allocation16_spill] sm:$0xff]  ;;  %v1557_v44 = vld [vmem:[#allocation17_spill] sm:$0xff] }
  0x3c   :  { %771 = vmatprep.subr.mxu0 %v1202_v45  ;;  %806 = vmatprep.subr.mxu1 %v1207_v46  ;;  %v1558_v45 = vld [vmem:[#allocation18_spill] sm:$0xff] }
  0x3d   :  { %772 = vmatpush3.msra.mxu0 %v1551_v52  ;;  %807 = vmatpush3.msra.mxu1 %v1552_v53  ;;  %v1559_v52 = vld [vmem:[#allocation19_spill] sm:$0xff]  ;;  %v1560_v53 = vld [vmem:[#allocation20_spill] sm:$0xff] }
  0x3e   :  { %773 = vmatprep.subr.mxu0 %v1553_v55  ;;  %808 = vmatprep.subr.mxu1 %v1554_v59  ;;  %v300_v59 = vrot.slane %v283_v49, %v1282_v63 }
  0x3f   :  { %774 = vmatpush3.msra.mxu0 %v1555_v42  ;;  %809 = vmatpush3.msra.mxu1 %v1556_v43 }
  0x40   :  { %775 = vmatprep.subr.mxu0 %v1557_v44  ;;  %810 = vmatprep.subr.mxu1 %v1558_v45  ;;  %v288_v44 = vrot.slane %v283_v49, %v1284_v38  ;;  %v296_v45 = vrot.slane %v283_v49, %v1286_v51 }
  0x41   :  { %776 = vmatpush3.msra.mxu0 %v1275_v61  ;;  %811 = vmatpush3.msra.mxu1 %v1280_v62 }
  0x42   :  { %777 = vmatprep.subr.mxu0 %v1559_v52  ;;  %812 = vmatprep.subr.mxu1 %v1560_v53 }
  0x43   :  { %778 = vmatpush3.msra.mxu0 %v1307_v48  ;;  %813 = vmatpush3.msra.mxu1 %v1312_v56 }
  0x44   :  { %779 = vmatprep.subr.mxu0 %v1325_v58  ;;  %814 = vmatprep.subr.mxu1 %v1330_v47 }
  0x45   :  { %780 = vmatpush3.msra.mxu0 %v1338_v57  ;;  %369 = vmatprep.mubr.f32.mxu0 %v292_v50 }
  0x46   :  { %815 = vmatpush3.msra.mxu1 %v1346_v54  ;;  %439 = vmatprep.mubr.f32.mxu1 %v300_v59 }
  0x47   :  { %370 = vmatmul.mubr.f32.vlgmr.msra.gmra.mxu0 %v288_v44  ;;  %440 = vmatmul.mubr.f32.vlgmr.msra.gmra.mxu1 %v296_v45 }
  0x48   :  { %819 = vmatprep.subr.mxu0 %v942_v0  ;;  %854 = vmatprep.subr.mxu1 %v947_v1  ;;  %v1561_v0 = vld [vmem:[#allocation6_spill] sm:$0xff]  ;;  %v1562_v1 = vld [vmem:[#allocation7_spill] sm:$0xff] }
  0x49   :  { %820 = vmatpush3.msra.mxu0 %v952_v2  ;;  %855 = vmatpush3.msra.mxu1 %v959_v3  ;;  %v1563_v2 = vld [vmem:[#allocation8_spill] sm:$0xff]  ;;  %v1564_v3 = vld [vmem:[#allocation9_spill] sm:$0xff] }
  0x4a   :  { %821 = vmatprep.subr.mxu0 %v964_v4  ;;  %856 = vmatprep.subr.mxu1 %v969_v5  ;;  %v1565_v4 = vld [vmem:[#allocation10_spill] sm:$0xff]  ;;  %v1566_v5 = vld [vmem:[#allocation11_spill] sm:$0xff] }
  0x4b   :  { %822 = vmatpush3.msra.mxu0 %v976_v6  ;;  %857 = vmatpush3.msra.mxu1 %v981_v7  ;;  %v1567_v6 = vld [vmem:[#allocation13_spill] sm:$0xff] }
  0x4c   :  { %823 = vmatprep.subr.mxu0 %v986_v8  ;;  %858 = vmatprep.subr.mxu1 %v993_v9  ;;  %v1568_v7 = vld [vmem:[#allocation17_spill] sm:$0xff]  ;;  %v1569_v8 = vld [vmem:[#allocation18_spill] sm:$0xff] }
  0x4d   :  { %824 = vmatpush3.msra.mxu0 %v998_v10  ;;  %859 = vmatpush3.msra.mxu1 %v1003_v11  ;;  %v1570_v9 = vld [vmem:[#allocation14_spill] sm:$0xff] }
  0x4e   :  { %825 = vmatprep.subr.mxu0 %v1010_v12  ;;  %860 = vmatprep.subr.mxu1 %v1015_v13  ;;  %v1571_v10 = vrot.slane %v1570_v9, %v1268_v60  ;;  %v1572_v11 = vrot.slane %v1570_v9, %v1282_v63  ;;  %v1573_v12 = vrot.slane %v1570_v9, %v1284_v38 }
  0x4f   :  { %826 = vmatpush3.msra.mxu0 %v1022_v14  ;;  %861 = vmatpush3.msra.mxu1 %v1027_v15  ;;  %v1574_v13 = vrot.slane %v1570_v9, %v1286_v51  ;;  %v917_v14 = vmov 0.0  }
  0x50   :  { %827 = vmatprep.subr.mxu0 %v1034_v16  ;;  %862 = vmatprep.subr.mxu1 %v1039_v17  ;;  %54 = vst.msk [vmem:[#allocation2] sm:$0x1] %vm53_vm0, %v917_v14 }
  0x51   :  { %828 = vmatpush3.msra.mxu0 %v1046_v18  ;;  %863 = vmatpush3.msra.mxu1 %v1051_v19 }
  0x52   :  { %829 = vmatprep.subr.mxu0 %v1058_v20  ;;  %864 = vmatprep.subr.mxu1 %v1063_v21 }
  0x53   :  { %830 = vmatpush3.msra.mxu0 %v1070_v22  ;;  %865 = vmatpush3.msra.mxu1 %v1075_v23 }
  0x54   :  { %831 = vmatprep.subr.mxu0 %v1082_v24  ;;  %866 = vmatprep.subr.mxu1 %v1087_v25 }
  0x55   :  { %832 = vmatpush3.msra.mxu0 %v1094_v26  ;;  %867 = vmatpush3.msra.mxu1 %v1099_v27 }
  0x56   :  { %833 = vmatprep.subr.mxu0 %v1106_v28  ;;  %868 = vmatprep.subr.mxu1 %v1111_v29 }
  0x57   :  { %834 = vmatpush3.msra.mxu0 %v1118_v30  ;;  %869 = vmatpush3.msra.mxu1 %v1123_v31 }
  0x58   :  { %835 = vmatprep.subr.mxu0 %v1130_v32  ;;  %870 = vmatprep.subr.mxu1 %v1135_v33 }
  0x59   :  { %836 = vmatpush3.msra.mxu0 %v1142_v34  ;;  %871 = vmatpush3.msra.mxu1 %v1147_v35 }
  0x5a   :  { %837 = vmatprep.subr.mxu0 %v1154_v36  ;;  %872 = vmatprep.subr.mxu1 %v1159_v37 }
  0x5b   :  { %838 = vmatpush3.msra.mxu0 %v1166_v39  ;;  %873 = vmatpush3.msra.mxu1 %v1171_v40 }
  0x5c   :  { %839 = vmatprep.subr.mxu0 %v1178_v41  ;;  %874 = vmatprep.subr.mxu1 %v1561_v0  ;;  %v618_v41 = vld [vmem:[#allocation2] sm:$0x1] }
  0x5d   :  { %840 = vmatpush3.msra.mxu0 %v1562_v1  ;;  %875 = vmatpush3.msra.mxu1 %v1563_v2 }
  0x5e   :  { %841 = vmatprep.subr.mxu0 %v1564_v3  ;;  %876 = vmatprep.subr.mxu1 %v1207_v46 }
  0x5f   :  { %842 = vmatpush3.msra.mxu0 %v1565_v4  ;;  %877 = vmatpush3.msra.mxu1 %v1566_v5 }
  0x60   :  { %843 = vmatprep.subr.mxu0 %v1553_v55  ;;  %878 = vmatprep.subr.mxu1 %v1567_v6 }
  0x61   :  { %844 = vmatpush3.msra.mxu0 %v1555_v42  ;;  %879 = vmatpush3.msra.mxu1 %v1556_v43 }
  0x62   :  { %845 = vmatprep.subr.mxu0 %v1568_v7  ;;  %880 = vmatprep.subr.mxu1 %v1569_v8 }
  0x63   :  { %846 = vmatpush3.msra.mxu0 %v1275_v61  ;;  %881 = vmatpush3.msra.mxu1 %v1280_v62 }
  0x64   :  { %847 = vmatprep.subr.mxu0 %v1559_v52  ;;  %882 = vmatprep.subr.mxu1 %v1560_v53 }
  0x65   :  { %848 = vmatpush3.msra.mxu0 %v1307_v48  ;;  %883 = vmatpush3.msra.mxu1 %v1312_v56 }
  0x66   :  { %849 = vmatprep.subr.mxu0 %v1325_v58  ;;  %884 = vmatprep.subr.mxu1 %v1330_v47 }
  0x67   :  { %850 = vmatpush3.msra.mxu0 %v1338_v57  ;;  %531 = vmatprep.mubr.f32.mxu0 %v1571_v10 }
  0x68   :  { %885 = vmatpush3.msra.mxu1 %v1346_v54  ;;  %601 = vmatprep.mubr.f32.mxu1 %v1572_v11 }
  0x69   :  { %532 = vmatmul.mubr.f32.vlgmr.msra.gmra.mxu0 %v1573_v12  ;;  %602 = vmatmul.mubr.f32.vlgmr.msra.gmra.mxu1 %v1574_v13 }
  0xe5   :  { %v711_v15 = vpop.f32.mrf.mxu0  ;;  %v746_v16 = vpop.f32.mrf.mxu1 }
  0xe7   :  { %v712_v17 = vpop.f32.mrf.mxu0  ;;  %v747_v18 = vpop.f32.mrf.mxu1 }
  0xe8   :  { %v713_v36 = vadd.f32 %v712_v17, %v711_v15  ;;  %v748_v37 = vadd.f32 %v747_v18, %v746_v16 }
  0xea   :  { %v280_v39 = vadd.f32 %v748_v37, %v713_v36 }
 0x107   :  { %v781_v19 = vpop.f32.mrf.mxu0  ;;  %v816_v20 = vpop.f32.mrf.mxu1 }
 0x109   :  { %v782_v21 = vpop.f32.mrf.mxu0  ;;  %v817_v22 = vpop.f32.mrf.mxu1 }
 0x10a   :  { %v783_v23 = vadd.f32 %v782_v21, %v781_v19  ;;  %v818_v24 = vadd.f32 %v817_v22, %v816_v20 }
 0x10c   :  { %v442_v29 = vadd.f32 %v818_v24, %v783_v23 }
 0x10e   :  { %v607_v33 = vmax.f32 %v442_v29, 1e-16 }
 0x129   :  { %v851_v25 = vpop.f32.mrf.mxu0  ;;  %v886_v26 = vpop.f32.mrf.mxu1 }
 0x12b   :  { %v852_v27 = vpop.f32.mrf.mxu0  ;;  %v887_v28 = vpop.f32.mrf.mxu1 }
 0x12c   :  { %v853_v30 = vadd.f32 %v852_v27, %v851_v25  ;;  %v888_v31 = vadd.f32 %v887_v28, %v886_v26 }
 0x12e   :  { %v604_v32 = vadd.f32 %v888_v31, %v853_v30 }
 0x130   :  { %v608_v34 = vmax.f32 %v604_v32, 1e-16 }
 0x132   :  { %v609_v35 = vmul.f32 %v608_v34, %v607_v33 }
 0x134   :  { %893 = vrsqrt.f32 %v609_v35 }
 0x141   :  { %v894_v40 = vpop.eup %893 }
 0x142   :  { %v611_v42 = vmul.f32 %v894_v40, %v280_v39 }
 0x144   :  { %v619_v43 = vadd.f32 %v618_v41, %v611_v42 }
 0x146   :  { %621 = vst.msk [vmem:[#allocation2] sm:$0x1] %vm53_vm0, %v619_v43 }
 0x14d   :  { %v639_v44 = vld [vmem:[#allocation2] sm:$0x1] }
 0x14e   :  { %v641_v45 = vsel %vm53_vm0, %v639_v44, 0.0 }
 0x14f   :  { %642 = vadd.xlane.f32.xlu0 %v641_v45 }
 0x1d8   :  { %v643_v46 = vpop.xlane.xlu0 %642 }
 0x1d9   :  { %v644_v47 = vrot.slane %v643_v46, 4 }
 0x1db   :  { %v645_v54 = vadd.f32 %v644_v47, %v643_v46 }
 0x1dd   :  { %v646_v56 = vrot.slane %v645_v54, 2 }
 0x1df   :  { %v647_v57 = vadd.f32 %v646_v56, %v645_v54 }
 0x1e1   :  { %v648_v58 = vrot.slane %v647_v57, 1 }
 0x1e3   :  { %v649_v60 = vadd.f32 %v648_v58, %v647_v57 }
 0x1e5   :  { %889 = vpush %v649_v60 }
 0x216   :  { %s890_s1 = spop %889 }
 0x217   :  { %v651_v61 = vstv %s890_s1 }
 0x218   :  { %652 = vst [vmem:[#allocation3] sm:$0xff] %v651_v61 }
 0x219   :  { %906 = shalt.err (!%p903_p4)
}
 0x21a   :  { %662 = dma.vmem_to_hbm [thread:$0]  %s660_s7, 128, %s1509_s3, [#allocation4]  }
 0x21b   :  { %915 = dma.done.wait [#allocation4], 128  }
 0x21c   :  { %916 = vsyncadd [#allocation4], 4294967168 }
 0x21d   :  { %666 = vsyncpa [#allocation4], 1 }

</bundles_post_ra>
